<compile_context>
chip_gen: v7x
topology: tpu7x:2x2x1
jax: 0.10.0
libtpu: 0.0.40
codegen_flags: <defaults>
</compile_context>

<pallas_src>
import functools

import jax
import jax.numpy as jnp
from jax.experimental import pallas as pl
from jax.experimental.pallas import tpu as pltpu


def _tile_pe_lanes(pe_tile, batch):
    """(tS, D) -> (tS, B*D): column b*D + d holds pe[s, d]."""
    if batch == 1:
        return pe_tile
    return jnp.concatenate([pe_tile] * batch, axis=-1)


def _pe_add_kernel(x_ref, pe_ref, o_ref, *, batch):
    pe = _tile_pe_lanes(pe_ref[...], batch)
    o_ref[...] = (x_ref[...] + pe).astype(o_ref.dtype)


def _pe_add_dropout_kernel(x_ref, pe_ref, bits_ref, o_ref, *, batch, threshold, scale):
    pe = _tile_pe_lanes(pe_ref[...], batch)
    y = x_ref[...] + pe
    # Inverted dropout: drop iff bits < threshold (threshold ~= p * 2^32),
    # survivors scaled by 1/(1-p).  One compare + one select on the VPU.
    keep = bits_ref[...] >= jnp.uint32(threshold)
    o_ref[...] = jnp.where(
        keep, y * jnp.asarray(scale, y.dtype), jnp.zeros_like(y)
    ).astype(o_ref.dtype)


def _seq_tile_rows(seq_len, lane_width, itemsize, target_bytes):
    """Largest multiple-of-8 row count whose x tile is <= target_bytes."""
    rows = target_bytes // max(1, lane_width * itemsize)
    rows = max(8, (rows // 8) * 8)
    return seq_len if rows >= seq_len else rows


def make_positional_encoding(d_model, dropout=0.1, max_len=5000,
                             dtype=jnp.float32, tile_target_bytes=4 * 1024 * 1024):
    """Builds the pe buffer (same formula as the PyTorch __init__) and returns a
    jitted forward(x, training=..., seed=...) backed by a Pallas kernel."""
    assert 0.0 <= dropout < 1.0

    position = jnp.arange(max_len, dtype=jnp.float32)[:, None]              # (max_len, 1)
    div_term = jnp.exp(
        jnp.arange(0, d_model, 2, dtype=jnp.float32)
        * (-jnp.log(jnp.float32(10000.0)) / d_model)
    )                                                                        # (d_model/2,)
    angles = position * div_term                                             # (max_len, d/2)
    pe = jnp.zeros((max_len, d_model), dtype=jnp.float32)
    pe = pe.at[:, 0::2].set(jnp.sin(angles))
    pe = pe.at[:, 1::2].set(jnp.cos(angles))
    pe = pe.astype(dtype)                                                    # (max_len, d_model)

    drop_threshold = min(int(round(dropout * float(2 ** 32))), 2 ** 32 - 1)
    keep_scale = 1.0 / (1.0 - dropout) if dropout > 0.0 else 1.0

    @functools.partial(jax.jit, static_argnames=("training",))
    def forward(x, *, training=False, seed=0):
        S, B, D = x.shape
        assert D == d_model and S <= max_len
        lane = B * D

        x2 = x.reshape(S, lane)                         # lane-dense view (free)
        pe_s = pe[:S].astype(x.dtype)                   # (S, D), no batch broadcast in HBM

        tS = _seq_tile_rows(S, lane, x.dtype.itemsize, tile_target_bytes)
        grid = (pl.cdiv(S, tS),)
        x_spec = pl.BlockSpec((tS, lane), lambda i: (i, 0))
        pe_spec = pl.BlockSpec((tS, D), lambda i: (i, 0))
        out_spec = pl.BlockSpec((tS, lane), lambda i: (i, 0))
        cparams = pltpu.CompilerParams(
            dimension_semantics=("parallel",),          # shard tiles across TCs (v7x)
            vmem_limit_bytes=48 * 1024 * 1024,
        )

        use_dropout = training and dropout > 0.0
        if use_dropout:
            bits = jax.random.bits(jax.random.PRNGKey(seed), (S, lane), dtype=jnp.uint32)
            kernel = functools.partial(
                _pe_add_dropout_kernel, batch=B,
                threshold=drop_threshold, scale=keep_scale)
            y2 = pl.pallas_call(
                kernel,
                out_shape=jax.ShapeDtypeStruct((S, lane), x.dtype),
                grid=grid,
                in_specs=[x_spec, pe_spec, x_spec],
                out_specs=out_spec,
                compiler_params=cparams,
            )(x2, pe_s, bits)
        else:
            kernel = functools.partial(_pe_add_kernel, batch=B)
            y2 = pl.pallas_call(
                kernel,
                out_shape=jax.ShapeDtypeStruct((S, lane), x.dtype),
                grid=grid,
                in_specs=[x_spec, pe_spec],
                out_specs=out_spec,
                compiler_params=cparams,
            )(x2, pe_s)

        return y2.reshape(S, B, D)

    return forward, pe


if __name__ == "__main__":
    S, B, D = 8, 2, 32  # (seq_len, batch, d_model)
    key = jax.random.PRNGKey(0)
    x = jax.random.normal(key, (S, B, D), dtype=jnp.float32)

    dropout_p = 0.1
    forward, pe = make_positional_encoding(d_model=D, dropout=dropout_p, max_len=5000)

    # Eval mode (dropout is identity) — check against pure-JAX reference.
    y_eval = jax.block_until_ready(forward(x, training=False))
    ref = x + pe[:S][:, None, :]
    if not jnp.allclose(y_eval, ref, atol=1e-6, rtol=1e-6):
        raise AssertionError("Pallas eval output does not match reference")

    # Training mode exercises the dropout path: each element must be either
    # exactly zero (dropped) or ref * 1/(1-p) (kept, inverted-dropout scale).
    y_train = jax.block_until_ready(forward(x, training=True, seed=1234))
    assert y_train.shape == (S, B, D)
    scaled = ref * jnp.float32(1.0 / (1.0 - dropout_p))
    ok = jnp.isclose(y_train, scaled, rtol=1e-5, atol=1e-6) | (y_train == 0.0)
    if not bool(jnp.all(ok)):
        raise AssertionError("Pallas dropout output has unexpected values")
    n_zero = int(jnp.sum(y_train == 0.0))
    if not (0 < n_zero < y_train.size):
        raise AssertionError("Dropout mask looks degenerate")

    print("KERNEL_OK")
</pallas_src>

<mosaic_0001>
module attributes {stable_mosaic.version = 11 : i64} {
  func.func @_pe_add_kernel(%arg0: i32, %arg1: memref<8x64xf32, #tpu.memory_space<vmem>>, %arg2: memref<8x32xf32, #tpu.memory_space<vmem>>, %arg3: memref<8x64xf32, #tpu.memory_space<vmem>>) attributes {dimension_semantics = [#tpu.dimension_semantics<parallel>], iteration_bounds = array<i64: 1>, scalar_prefetch = 0 : i64, scratch_operands = 0 : i64, tpu.core_type = #tpu.core_type<tc>, window_params = [{transform_indices = @transform_0, window_bounds = array<i64: 8, 64>}, {transform_indices = @transform_1, window_bounds = array<i64: 8, 32>}, {transform_indices = @transform_2, window_bounds = array<i64: 8, 64>}]} {
    %c0 = arith.constant 0 : index
    %c0_0 = arith.constant 0 : index
    %0 = vector.load %arg2[%c0, %c0_0] : memref<8x32xf32, #tpu.memory_space<vmem>>, vector<8x32xf32>
    %1 = tpu.concatenate %0, %0 in 1 : vector<8x32xf32>, vector<8x32xf32> -> vector<8x64xf32>
    %c0_1 = arith.constant 0 : index
    %c0_2 = arith.constant 0 : index
    %2 = vector.load %arg1[%c0_1, %c0_2] : memref<8x64xf32, #tpu.memory_space<vmem>>, vector<8x64xf32>
    %3 = arith.addf %2, %1 : vector<8x64xf32>
    %c0_3 = arith.constant 0 : index
    %c0_4 = arith.constant 0 : index
    %4 = vector.load %arg3[%c0_3, %c0_4] : memref<8x64xf32, #tpu.memory_space<vmem>>, vector<8x64xf32>
    tpu.vector_store %arg3[%c0_3, %c0_4], %3 {strides = array<i32>} : memref<8x64xf32, #tpu.memory_space<vmem>>, vector<8x64xf32>,
    return
  }
  func.func @transform_0(%arg0: i32) -> (i32, i32) {
    %c0_i32 = arith.constant 0 : i32
    %c0_i32_0 = arith.constant 0 : i32
    return %arg0, %c0_i32 : i32, i32
  }
  func.func @transform_1(%arg0: i32) -> (i32, i32) {
    %c0_i32 = arith.constant 0 : i32
    %c0_i32_0 = arith.constant 0 : i32
    return %arg0, %c0_i32 : i32, i32
  }
  func.func @transform_2(%arg0: i32) -> (i32, i32) {
    %c0_i32 = arith.constant 0 : i32
    %c0_i32_0 = arith.constant 0 : i32
    return %arg0, %c0_i32 : i32, i32
  }
}

</mosaic_0001>

<bundles_post_ra>
// kernel: forward.1
= control target key start
LH: loop header
LB: loop body
LE: loop exit
PB: predicated region body
PF: predicated region fallthrough
CT: control target
= control target key end

     0   :  { %s27_s11 = smov 32   ;;  %vm16_vm0 = vcmask 261120   ;;  %vm20_vm1 = vcmask 523264   ;;  %s52_s1 = inlined_call_operand.vmem [shape: f32[8,32], index: 1, kind: input, shape index: {}]   ;;  %s53_s0 = inlined_call_operand.vmem [shape: f32[8,64], index: 0, kind: input, shape index: {}]   ;;  %s54_s2 = inlined_call_operand.vmem [shape: f32[8,64], index: 2, kind: output, shape index: {}]  }
   0x1   :  { %v11_v0 = vld [vmem:[%s52_s1] sm:$0xff] }
   0x2   :  { %13 = vrot.lane.b32.xlu0 %v11_v0, %s27_s11  ;;  %v18_v1 = vld [vmem:[%s53_s0] sm:$0xff] }
  0x74   :  { %v14_v2 = vpop.permute.xlu0 %13 }
  0x75   :  { %v17_v3 = vsel %vm16_vm0, %v11_v0, %v14_v2 }
  0x76   :  { %v19_v4 = vadd.f32 %v18_v1, %v17_v3 }
  0x78   :  { %21 = vst.msk [vmem:[%s54_s2] sm:$0xff] %vm20_vm1, %v19_v4 }

</bundles_post_ra>
